<compile_context>
chip_gen: v7x
topology: tpu7x:2x2x1
jax: 0.10.0
libtpu: 0.0.40
codegen_flags: <defaults>
</compile_context>

<pallas_src>
import functools

import jax
import jax.numpy as jnp
from jax.experimental import pallas as pl
from jax.experimental.pallas import tpu as pltpu

LANE = 128          # lane width: last dims padded to multiples of this
SUBLANE_BF16 = 16   # bf16 sublane packing: batch padded to multiples of this


def _round_up(x, m):
    return ((x + m - 1) // m) * m


def mlp_fwd_kernel(x_ref, w1_ref, w2_ref, w3_ref, b_ref, o_ref,
                   *, p_h1, p_h2, p_out):
    """Fused 3-layer MLP on one batch tile.

    x_ref:  (TB, P_in)   bf16
    w*_ref: (P_a, P_b)   bf16   (resident across grid steps)
    b_ref:  (8, P_max)   f32    rows 0/1/2 hold b1/b2/b3 (resident)
    o_ref:  (TB, P_out)  f32    lane-dense output tile
    """
    b = b_ref[...]  # (8, P_max) f32, already in VMEM

    # Layer 1: Linear (bf16 x bf16 -> f32 acc) + bias + ReLU
    h = jnp.dot(x_ref[...], w1_ref[...], preferred_element_type=jnp.float32)
    h = jnp.maximum(h + b[0:1, :p_h1], 0.0)

    # Layer 2: Linear + bias + ReLU
    h = jnp.dot(h.astype(jnp.bfloat16), w2_ref[...],
                preferred_element_type=jnp.float32)
    h = jnp.maximum(h + b[1:2, :p_h2], 0.0)

    # Output layer: Linear + bias (logits, no activation)
    o = jnp.dot(h.astype(jnp.bfloat16), w3_ref[...],
                preferred_element_type=jnp.float32)
    o_ref[...] = (o + b[2:3, :p_out]).astype(o_ref.dtype)


@functools.partial(jax.jit, static_argnames=("tb",))
def mlp_forward(x, params, *, tb=128):
    """Fused OWM-MLP forward pass.  x: [B, n_inputs] float32."""
    (w1, b1), (w2, b2), (w3, b3) = params
    B, n_in = x.shape
    n_h1 = w1.shape[1]
    n_h2 = w2.shape[1]
    n_out = w3.shape[1]

    # Lane-dense padded feature dims.
    p_in = _round_up(n_in, LANE)
    p_h1 = _round_up(n_h1, LANE)
    p_h2 = _round_up(n_h2, LANE)
    p_out = _round_up(n_out, LANE)
    p_max = max(p_h1, p_h2, p_out)

    # Batch tile: don't pad a tiny batch all the way to 128 rows.
    tb_eff = min(tb, _round_up(B, SUBLANE_BF16))
    b_pad = _round_up(B, tb_eff)

    f32 = jnp.float32
    bf16 = jnp.bfloat16

    # Zero-pad + cast matmul operands to bf16 (f32 accumulate on the MXU).
    xp = jnp.zeros((b_pad, p_in), bf16).at[:B, :n_in].set(x.astype(bf16))
    w1p = jnp.zeros((p_in, p_h1), bf16).at[:n_in, :n_h1].set(w1.astype(bf16))
    w2p = jnp.zeros((p_h1, p_h2), bf16).at[:n_h1, :n_h2].set(w2.astype(bf16))
    w3p = jnp.zeros((p_h2, p_out), bf16).at[:n_h2, :n_out].set(w3.astype(bf16))

    # Pack the three biases into one f32 slab (single DMA, (8,128)-aligned).
    bp = jnp.zeros((8, p_max), f32)
    bp = bp.at[0, :n_h1].set(b1.reshape(-1).astype(f32))
    bp = bp.at[1, :n_h2].set(b2.reshape(-1).astype(f32))
    bp = bp.at[2, :n_out].set(b3.reshape(-1).astype(f32))

    kernel = functools.partial(mlp_fwd_kernel, p_h1=p_h1, p_h2=p_h2, p_out=p_out)

    out_pad = pl.pallas_call(
        kernel,
        out_shape=jax.ShapeDtypeStruct((b_pad, p_out), f32),
        grid=(b_pad // tb_eff,),
        in_specs=[
            # x tile streams over the batch grid (auto double-buffered).
            pl.BlockSpec((tb_eff, p_in), lambda i: (i, 0)),
            # Weights / biases: constant block index -> resident in VMEM.
            pl.BlockSpec((p_in, p_h1), lambda i: (0, 0)),
            pl.BlockSpec((p_h1, p_h2), lambda i: (0, 0)),
            pl.BlockSpec((p_h2, p_out), lambda i: (0, 0)),
            pl.BlockSpec((8, p_max), lambda i: (0, 0)),
        ],
        out_specs=pl.BlockSpec((tb_eff, p_out), lambda i: (i, 0)),
        compiler_params=pltpu.CompilerParams(
            dimension_semantics=("parallel",),  # batch axis splits across TCs
        ),
    )(xp, w1p, w2p, w3p, bp)

    return out_pad[:B, :n_out]


def init_params(key, sizes):
    """Deterministic init of Linear layers.

    PyTorch nn.Linear weight is [out, in]; we store the transposed [in, out]
    form so the kernel can do x @ W without an in-kernel transpose.
    """
    params = []
    for i in range(len(sizes) - 1):
        fan_in, fan_out = sizes[i], sizes[i + 1]
        key, kw, kb = jax.random.split(key, 3)
        bound = 1.0 / jnp.sqrt(fan_in)
        w = jax.random.uniform(kw, (fan_in, fan_out), jnp.float32, -bound, bound)
        b = jax.random.uniform(kb, (1, fan_out), jnp.float32, -bound, bound)
        params.append((w, b))
    return params


def reference_forward_f32(x, params):
    """Full-f32 pure-JAX reference."""
    (w1, b1), (w2, b2), (w3, b3) = params
    h = jnp.maximum(x @ w1 + b1, 0.0)
    h = jnp.maximum(h @ w2 + b2, 0.0)
    return h @ w3 + b3


def reference_forward_bf16(x, params):
    """Pure-JAX reference matching the kernel's bf16-input / f32-acc path."""
    (w1, b1), (w2, b2), (w3, b3) = params
    bf16, f32 = jnp.bfloat16, jnp.float32
    h = jnp.dot(x.astype(bf16), w1.astype(bf16), preferred_element_type=f32)
    h = jnp.maximum(h + b1, 0.0)
    h = jnp.dot(h.astype(bf16), w2.astype(bf16), preferred_element_type=f32)
    h = jnp.maximum(h + b2, 0.0)
    o = jnp.dot(h.astype(bf16), w3.astype(bf16), preferred_element_type=f32)
    return o + b3


if __name__ == "__main__":
    key = jax.random.PRNGKey(0)

    # --- Small shapes consistent with Net(n_inputs, n_outputs, n_tasks, args)
    #     with args.n_layers = 2, args.n_hiddens = 32. ---------------------
    batch, n_inputs, n_hiddens, n_outputs = 8, 32, 32, 16
    sizes = [n_inputs, n_hiddens, n_hiddens, n_outputs]

    key, kx = jax.random.split(key)
    x = jax.random.normal(kx, (batch, n_inputs), jnp.float32)
    params = init_params(key, sizes)

    # `t` (task id) and `flag` do not change the forward math; they gate OWM
    # projection-matrix updates which belong to observe() (training).
    out = jax.block_until_ready(mlp_forward(x, params))
    assert out.shape == (batch, n_outputs)

    ref_bf16 = reference_forward_bf16(x, params)
    ref_f32 = reference_forward_f32(x, params)
    assert jnp.allclose(out, ref_bf16, atol=5e-3, rtol=5e-3), "bf16-path mismatch"
    assert jnp.allclose(out, ref_f32, atol=3e-2, rtol=3e-2), "f32-path mismatch"

    # --- Larger, OWM-realistic shapes to exercise batch tiling/pipelining ---
    batch2, n_in2, n_h2, n_out2 = 256, 784, 800, 10
    sizes2 = [n_in2, n_h2, n_h2, n_out2]
    key, kx2, kp2 = jax.random.split(key, 3)
    x2 = jax.random.normal(kx2, (batch2, n_in2), jnp.float32)
    params2 = init_params(kp2, sizes2)

    out2 = jax.block_until_ready(mlp_forward(x2, params2))
    assert out2.shape == (batch2, n_out2)
    ref2 = reference_forward_bf16(x2, params2)
    assert jnp.allclose(out2, ref2, atol=1e-2, rtol=1e-2), "large-shape mismatch"

    # TODO(synk): observe()/OWM orthogonal-projection weight updates are a
    # training-time procedure (backward pass + custom optimizer) and are not
    # part of the forward kernel.
    print("KERNEL_OK")
</pallas_src>

<mosaic_0001>
module attributes {stable_mosaic.version = 11 : i64} {
  func.func @mlp_fwd_kernel(%arg0: i32, %arg1: memref<16x128xbf16, #tpu.memory_space<vmem>>, %arg2: memref<128x128xbf16, #tpu.memory_space<vmem>>, %arg3: memref<128x128xbf16, #tpu.memory_space<vmem>>, %arg4: memref<128x128xbf16, #tpu.memory_space<vmem>>, %arg5: memref<8x128xf32, #tpu.memory_space<vmem>>, %arg6: memref<16x128xf32, #tpu.memory_space<vmem>>) attributes {dimension_semantics = [#tpu.dimension_semantics<parallel>], iteration_bounds = array<i64: 1>, scalar_prefetch = 0 : i64, scratch_operands = 0 : i64, tpu.core_type = #tpu.core_type<tc>, window_params = [{transform_indices = @transform_0, window_bounds = array<i64: 16, 128>}, {pipeline_mode = #tpu.pipeline_mode<synchronous>, transform_indices = @transform_1, window_bounds = array<i64: 128, 128>}, {pipeline_mode = #tpu.pipeline_mode<synchronous>, transform_indices = @transform_2, window_bounds = array<i64: 128, 128>}, {pipeline_mode = #tpu.pipeline_mode<synchronous>, transform_indices = @transform_3, window_bounds = array<i64: 128, 128>}, {pipeline_mode = #tpu.pipeline_mode<synchronous>, transform_indices = @transform_4, window_bounds = array<i64: 8, 128>}, {transform_indices = @transform_5, window_bounds = array<i64: 16, 128>}]} {
    %c0 = arith.constant 0 : index
    %c0_0 = arith.constant 0 : index
    %0 = vector.load %arg5[%c0, %c0_0] : memref<8x128xf32, #tpu.memory_space<vmem>>, vector<8x128xf32>
    %c0_1 = arith.constant 0 : index
    %c0_2 = arith.constant 0 : index
    %1 = vector.load %arg1[%c0_1, %c0_2] : memref<16x128xbf16, #tpu.memory_space<vmem>>, vector<16x128xbf16>
    %c0_3 = arith.constant 0 : index
    %c0_4 = arith.constant 0 : index
    %2 = vector.load %arg2[%c0_3, %c0_4] : memref<128x128xbf16, #tpu.memory_space<vmem>>, vector<128x128xbf16>
    %cst = arith.constant dense<0.000000e+00> : vector<16x128xf32>
    %3 = tpu.matmul %1, %2, %cst {dimension_numbers = #tpu.dot_dimension_numbers<[1], [0], [0], [1], [0, 0, 1, 1], [], []>} : vector<16x128xbf16>, vector<128x128xbf16>, vector<16x128xf32> -> vector<16x128xf32>
    %4 = vector.extract_strided_slice %0 {offsets = [0, 0], sizes = [1, 128], strides = [1, 1]} : vector<8x128xf32> to vector<1x128xf32>
    %5 = vector.broadcast %4 : vector<1x128xf32> to vector<16x128xf32>
    %6 = arith.addf %3, %5 : vector<16x128xf32>
    %cst_5 = arith.constant 0.000000e+00 : f32
    %7 = vector.broadcast %cst_5 : f32 to vector<16x128xf32>
    %8 = arith.maximumf %6, %7 : vector<16x128xf32>
    %9 = arith.truncf %8 : vector<16x128xf32> to vector<16x128xbf16>
    %c0_6 = arith.constant 0 : index
    %c0_7 = arith.constant 0 : index
    %10 = vector.load %arg3[%c0_6, %c0_7] : memref<128x128xbf16, #tpu.memory_space<vmem>>, vector<128x128xbf16>
    %cst_8 = arith.constant dense<0.000000e+00> : vector<16x128xf32>
    %11 = tpu.matmul %9, %10, %cst_8 {dimension_numbers = #tpu.dot_dimension_numbers<[1], [0], [0], [1], [0, 0, 1, 1], [], []>} : vector<16x128xbf16>, vector<128x128xbf16>, vector<16x128xf32> -> vector<16x128xf32>
    %12 = vector.extract_strided_slice %0 {offsets = [1, 0], sizes = [1, 128], strides = [1, 1]} : vector<8x128xf32> to vector<1x128xf32>
    %13 = vector.broadcast %12 : vector<1x128xf32> to vector<16x128xf32>
    %14 = arith.addf %11, %13 : vector<16x128xf32>
    %cst_9 = arith.constant 0.000000e+00 : f32
    %15 = vector.broadcast %cst_9 : f32 to vector<16x128xf32>
    %16 = arith.maximumf %14, %15 : vector<16x128xf32>
    %17 = arith.truncf %16 : vector<16x128xf32> to vector<16x128xbf16>
    %c0_10 = arith.constant 0 : index
    %c0_11 = arith.constant 0 : index
    %18 = vector.load %arg4[%c0_10, %c0_11] : memref<128x128xbf16, #tpu.memory_space<vmem>>, vector<128x128xbf16>
    %cst_12 = arith.constant dense<0.000000e+00> : vector<16x128xf32>
    %19 = tpu.matmul %17, %18, %cst_12 {dimension_numbers = #tpu.dot_dimension_numbers<[1], [0], [0], [1], [0, 0, 1, 1], [], []>} : vector<16x128xbf16>, vector<128x128xbf16>, vector<16x128xf32> -> vector<16x128xf32>
    %20 = vector.extract_strided_slice %0 {offsets = [2, 0], sizes = [1, 128], strides = [1, 1]} : vector<8x128xf32> to vector<1x128xf32>
    %21 = vector.broadcast %20 : vector<1x128xf32> to vector<16x128xf32>
    %22 = arith.addf %19, %21 : vector<16x128xf32>
    %c0_13 = arith.constant 0 : index
    %c0_14 = arith.constant 0 : index
    %23 = vector.load %arg6[%c0_13, %c0_14] : memref<16x128xf32, #tpu.memory_space<vmem>>, vector<16x128xf32>
    tpu.vector_store %arg6[%c0_13, %c0_14], %22 {strides = array<i32>} : memref<16x128xf32, #tpu.memory_space<vmem>>, vector<16x128xf32>,
    return
  }
  func.func @transform_0(%arg0: i32) -> (i32, i32) {
    %c0_i32 = arith.constant 0 : i32
    %c0_i32_0 = arith.constant 0 : i32
    return %arg0, %c0_i32 : i32, i32
  }
  func.func @transform_1(%arg0: i32) -> (i32, i32) {
    %c0_i32 = arith.constant 0 : i32
    %c0_i32_0 = arith.constant 0 : i32
    %c0_i32_1 = arith.constant 0 : i32
    return %c0_i32, %c0_i32_0 : i32, i32
  }
  func.func @transform_2(%arg0: i32) -> (i32, i32) {
    %c0_i32 = arith.constant 0 : i32
    %c0_i32_0 = arith.constant 0 : i32
    %c0_i32_1 = arith.constant 0 : i32
    return %c0_i32, %c0_i32_0 : i32, i32
  }
  func.func @transform_3(%arg0: i32) -> (i32, i32) {
    %c0_i32 = arith.constant 0 : i32
    %c0_i32_0 = arith.constant 0 : i32
    %c0_i32_1 = arith.constant 0 : i32
    return %c0_i32, %c0_i32_0 : i32, i32
  }
  func.func @transform_4(%arg0: i32) -> (i32, i32) {
    %c0_i32 = arith.constant 0 : i32
    %c0_i32_0 = arith.constant 0 : i32
    %c0_i32_1 = arith.constant 0 : i32
    return %c0_i32, %c0_i32_0 : i32, i32
  }
  func.func @transform_5(%arg0: i32) -> (i32, i32) {
    %c0_i32 = arith.constant 0 : i32
    %c0_i32_0 = arith.constant 0 : i32
    return %arg0, %c0_i32 : i32, i32
  }
}

</mosaic_0001>

<bundles_post_ra>
// kernel: mlp_forward.1
= control target key start
LH: loop header
LB: loop body
LE: loop exit
PB: predicated region body
PF: predicated region fallthrough
CT: control target
= control target key end

     0   :  { %v508_v0 = vmov 0.0   ;;  %vm509_vm0 = vmmov 0   ;;  %v40_v24 = vlaneseq  ;;  %s654_s1 = inlined_call_operand.vmem [shape: bf16[128,128], index: 1, kind: input, shape index: {}]   ;;  %s655_s2 = inlined_call_operand.vmem [shape: bf16[128,128], index: 2, kind: input, shape index: {}]   ;;  %s656_s0 = inlined_call_operand.vmem [shape: bf16[16,128], index: 0, kind: input, shape index: {}]   ;;  %s657_s3 = inlined_call_operand.vmem [shape: bf16[128,128], index: 3, kind: input, shape index: {}]   ;;  %s658_s4 = inlined_call_operand.vmem [shape: f32[8,128], index: 4, kind: input, shape index: {}]   ;;  %s659_s5 = inlined_call_operand.vmem [shape: f32[16,128], index: 5, kind: output, shape index: {}]  }
   0x1   :  { %421 = vmatprep.subr.bf16.mxu0 %v508_v0  ;;  %v483_v1 = vld [vmem:[%s654_s1] sm:$0xff]   ;;  %437 = vmatprep.mubr.msk.bf16.mxu0 %vm509_vm0, %v508_v0  ;;  %v484_v2 = vld [vmem:[%s654_s1 + $0x8] sm:$0xff]   ;;  %v485_v3 = vld [vmem:[%s654_s1 + $0x10] sm:$0xff]  }
   0x2   :  { %441 = vmatprep.subr.bf16.mxu1 %v508_v0  ;;  %457 = vmatprep.mubr.msk.bf16.mxu1 %vm509_vm0, %v508_v0  ;;  %v492_v4 = vld [vmem:[%s655_s2] sm:$0xff]   ;;  %v486_v5 = vld [vmem:[%s654_s1 + $0x18] sm:$0xff]   ;;  %v493_v6 = vld [vmem:[%s655_s2 + $0x8] sm:$0xff]   ;;  %v41_v25 = vshrl.u32 %v40_v24, 7 }
   0x3   :  { %422 = vmatpush3.bf16.msra.mxu0 %v483_v1  ;;  %442 = vmatpush3.bf16.msra.mxu1 %v492_v4  ;;  %v487_v7 = vld [vmem:[%s654_s1 + $0x20] sm:$0xff]   ;;  %v494_v8 = vld [vmem:[%s655_s2 + $0x10] sm:$0xff]   ;;  %v488_v9 = vld [vmem:[%s654_s1 + $0x28] sm:$0xff]  }
   0x4   :  { %423 = vmatprep.subr.bf16.mxu0 %v508_v0  ;;  %443 = vmatprep.subr.bf16.mxu1 %v508_v0  ;;  %v495_v10 = vld [vmem:[%s655_s2 + $0x18] sm:$0xff]   ;;  %v489_v11 = vld [vmem:[%s654_s1 + $0x30] sm:$0xff]   ;;  %v496_v12 = vld [vmem:[%s655_s2 + $0x20] sm:$0xff]   ;;  %v42_v26 = vsub.s32 0, %v41_v25  ;;  %v160_v40 = vsub.s32 1, %v41_v25  ;;  %v272_v51 = vsub.s32 2, %v41_v25 }
   0x5   :  { %v490_v13 = vld [vmem:[%s654_s1 + $0x38] sm:$0xff]   ;;  %v497_v14 = vld [vmem:[%s655_s2 + $0x28] sm:$0xff]   ;;  %v491_v15 = vld [vmem:[%s656_s0] sm:$0xff]  }
   0x6   :  { %v498_v16 = vld [vmem:[%s655_s2 + $0x30] sm:$0xff]   ;;  %v499_v17 = vld [vmem:[%s655_s2 + $0x38] sm:$0xff]   ;;  %v500_v18 = vld [vmem:[%s657_s3] sm:$0xff]  }
   0x7   :  { %424 = vmatpush3.bf16.msra.mxu0 %v484_v2  ;;  %444 = vmatpush3.bf16.msra.mxu1 %v493_v6  ;;  %v501_v19 = vld [vmem:[%s657_s3 + $0x8] sm:$0xff]   ;;  %v502_v20 = vld [vmem:[%s657_s3 + $0x10] sm:$0xff]   ;;  %v503_v21 = vld [vmem:[%s657_s3 + $0x18] sm:$0xff]  }
   0x8   :  { %425 = vmatprep.subr.bf16.mxu0 %v508_v0  ;;  %445 = vmatprep.subr.bf16.mxu1 %v508_v0  ;;  %v504_v22 = vld [vmem:[%s657_s3 + $0x20] sm:$0xff]   ;;  %v505_v23 = vld [vmem:[%s657_s3 + $0x28] sm:$0xff]   ;;  %v506_v38 = vld [vmem:[%s657_s3 + $0x30] sm:$0xff]  }
   0x9   :  { %v21_v27 = vld [vmem:[%s658_s4] sm:$0xff]  ;;  %v507_v39 = vld [vmem:[%s657_s3 + $0x38] sm:$0xff]  }
   0xa   :  { %v43_v28 = vrot.slane %v21_v27, %v42_v26  ;;  %v161_v41 = vrot.slane %v21_v27, %v160_v40  ;;  %v273_v52 = vrot.slane %v21_v27, %v272_v51 }
   0xb   :  { %426 = vmatpush3.bf16.msra.mxu0 %v485_v3  ;;  %446 = vmatpush3.bf16.msra.mxu1 %v494_v8 }
   0xc   :  { %427 = vmatprep.subr.bf16.mxu0 %v508_v0  ;;  %447 = vmatprep.subr.bf16.mxu1 %v508_v0 }
   0xf   :  { %428 = vmatpush3.bf16.msra.mxu0 %v486_v5  ;;  %448 = vmatpush3.bf16.msra.mxu1 %v495_v10 }
  0x10   :  { %429 = vmatprep.subr.bf16.mxu0 %v508_v0  ;;  %449 = vmatprep.subr.bf16.mxu1 %v508_v0 }
  0x13   :  { %430 = vmatpush3.bf16.msra.mxu0 %v487_v7  ;;  %450 = vmatpush3.bf16.msra.mxu1 %v496_v12 }
  0x14   :  { %431 = vmatprep.subr.bf16.mxu0 %v508_v0  ;;  %451 = vmatprep.subr.bf16.mxu1 %v508_v0 }
  0x17   :  { %432 = vmatpush3.bf16.msra.mxu0 %v488_v9  ;;  %452 = vmatpush3.bf16.msra.mxu1 %v497_v14 }
  0x18   :  { %433 = vmatprep.subr.bf16.mxu0 %v508_v0  ;;  %453 = vmatprep.subr.bf16.mxu1 %v508_v0 }
  0x1b   :  { %434 = vmatpush3.bf16.msra.mxu0 %v489_v11  ;;  %454 = vmatpush3.bf16.msra.mxu1 %v498_v16 }
  0x1c   :  { %435 = vmatprep.subr.bf16.mxu0 %v508_v0  ;;  %455 = vmatprep.subr.bf16.mxu1 %v508_v0 }
  0x1f   :  { %436 = vmatpush3.bf16.msra.mxu0 %v490_v13  ;;  %456 = vmatpush3.bf16.msra.mxu1 %v499_v17 }
  0x20   :  { %461 = vmatprep.subr.bf16.mxu0 %v508_v0 }
  0x22   :  { %438 = vmatmul.mubr.bf16.vlgmr.msra.gmra.mrb[0].mxu0 %v491_v15 }
  0x23   :  { %477 = vmatprep.mubr.msk.bf16.mxu0 %vm509_vm0, %v508_v0  ;;  %462 = vmatpush3.bf16.msra.mxu0 %v500_v18 }
  0x24   :  { %463 = vmatprep.subr.bf16.mxu0 %v508_v0 }
  0x27   :  { %464 = vmatpush3.bf16.msra.mxu0 %v501_v19 }
  0x28   :  { %465 = vmatprep.subr.bf16.mxu0 %v508_v0 }
  0x2b   :  { %466 = vmatpush3.bf16.msra.mxu0 %v502_v20 }
  0x2c   :  { %467 = vmatprep.subr.bf16.mxu0 %v508_v0 }
  0x2f   :  { %468 = vmatpush3.bf16.msra.mxu0 %v503_v21 }
  0x30   :  { %469 = vmatprep.subr.bf16.mxu0 %v508_v0 }
  0x33   :  { %470 = vmatpush3.bf16.msra.mxu0 %v504_v22 }
  0x34   :  { %471 = vmatprep.subr.bf16.mxu0 %v508_v0 }
  0x37   :  { %472 = vmatpush3.bf16.msra.mxu0 %v505_v23 }
  0x38   :  { %473 = vmatprep.subr.bf16.mxu0 %v508_v0 }
  0x3b   :  { %474 = vmatpush3.bf16.msra.mxu0 %v506_v38 }
  0x3c   :  { %475 = vmatprep.subr.bf16.mxu0 %v508_v0 }
  0x3f   :  { %476 = vmatpush3.bf16.msra.mxu0 %v507_v39 }
  0xf5   :  { %v132_v29 = vpop.f32.mrb[0].mxu0 }
  0xf6   :  { %v133_v30 = vadd.f32 %v132_v29, %v43_v28  ;;  %v439_v31 = vpop.f32.mrb[1].mxu0 }
  0xf7   :  { %v135_v32 = vpop.f32.mrb[2].mxu0 }
  0xf8   :  { %v136_v33 = vadd.f32 %v135_v32, %v43_v28  ;;  %v440_v34 = vpop.f32.mrb[3].mxu0  ;;  %v139_v35 = vmax.f32 %v133_v30, 0.0 }
  0xfa   :  { %v140_v36 = vmax.f32 %v136_v33, 0.0 }
  0xfc   :  { %v141_v37 = vpack.c.bf16 %v140_v36, %v139_v35 }
  0xfe   :  { %458 = vmatmul.mubr.bf16.vlgmr.msra.gmra.mrb[0].mxu1 %v141_v37 }
 0x1d1   :  { %v244_v42 = vpop.f32.mrb[0].mxu1 }
 0x1d2   :  { %v245_v43 = vadd.f32 %v244_v42, %v161_v41  ;;  %v459_v44 = vpop.f32.mrb[1].mxu1 }
 0x1d3   :  { %v247_v45 = vpop.f32.mrb[2].mxu1 }
 0x1d4   :  { %v248_v46 = vadd.f32 %v247_v45, %v161_v41  ;;  %v460_v47 = vpop.f32.mrb[3].mxu1  ;;  %v251_v48 = vmax.f32 %v245_v43, 0.0 }
 0x1d6   :  { %v252_v49 = vmax.f32 %v248_v46, 0.0 }
 0x1d8   :  { %v253_v50 = vpack.c.bf16 %v252_v49, %v251_v48 }
 0x1da   :  { %478 = vmatmul.mubr.bf16.vlgmr.msra.gmra.mrb[4].mxu0 %v253_v50 }
 0x2ad   :  { %v356_v53 = vpop.f32.mrb[4].mxu0 }
 0x2ae   :  { %v357_v54 = vadd.f32 %v356_v53, %v273_v52  ;;  %v479_v55 = vpop.f32.mrb[5].mxu0 }
 0x2af   :  { %v359_v56 = vpop.f32.mrb[6].mxu0 }
 0x2b0   :  { %363 = vst [vmem:[%s659_s5] sm:$0xff] %v357_v54  ;;  %v360_v57 = vadd.f32 %v359_v56, %v273_v52  ;;  %v480_v58 = vpop.f32.mrb[7].mxu0 }
 0x2b2   :  { %364 = vst [vmem:[%s659_s5 + $0x8] sm:$0xff] %v360_v57 }

</bundles_post_ra>
